<compile_context>
chip_gen: v7x
topology: tpu7x:2x2x1
jax: 0.10.0
libtpu: 0.0.40
codegen_flags: <defaults>
</compile_context>

<pallas_src>
import jax
import jax.numpy as jnp
from jax.experimental import pallas as pl
from jax.experimental.pallas import tpu as pltpu


def _round_up(x, m):
    return ((x + m - 1) // m) * m


def _pick_tile(dim, align, cap):
    """Largest multiple of `align` that divides round_up(dim, align) and is <= cap."""
    padded = _round_up(max(dim, 1), align)
    if padded <= cap:
        return padded
    best = align
    t = align
    while t <= cap:
        if padded % t == 0:
            best = t
        t += align
    return best


def _linear_kernel(x_ref, w_ref, b_ref, o_ref):
    k = pl.program_id(2)

    @pl.when(k == 0)
    def _init():
        o_ref[...] = jnp.zeros_like(o_ref)

    # (tm, tk) @ (tk, tn) -> (tm, tn) f32 on the MXU; canonical contraction,
    # weight already laid out as (K, N) so no per-step relayout/transpose.
    o_ref[...] += jnp.dot(x_ref[...], w_ref[...],
                          preferred_element_type=jnp.float32)

    @pl.when(k == pl.num_programs(2) - 1)
    def _finalize():
        o_ref[...] += b_ref[...]          # bias add off the per-K-step path


def prepare_linear_params(weight, bias, *, tn, tk):
    """One-time (init-time) param prep: pad, cast to bf16, transpose to (Kp, Np)."""
    out_features, in_features = weight.shape
    Kp = _round_up(in_features, tk)
    Np = _round_up(out_features, tn)
    w_t = weight.astype(jnp.bfloat16).T                       # (In, Out)
    if (Kp, Np) == (in_features, out_features):
        w_p = w_t
    else:
        w_p = jnp.zeros((Kp, Np), jnp.bfloat16).at[:in_features,
                                                   :out_features].set(w_t)
    b_p = jnp.zeros((1, Np), jnp.float32).at[0, :out_features].set(
        bias.astype(jnp.float32))
    return w_p, b_p


def linear_forward_prepared(x, w_p, b_p, out_features, *, tm, tn, tk):
    """x: (B, In) f32; w_p: (Kp, Np) bf16; b_p: (1, Np) f32 -> (B, Out) f32."""
    B, In = x.shape
    Kp, Np = w_p.shape
    Mp = _round_up(B, tm)
    gm, gn, gk = Mp // tm, Np // tn, Kp // tk

    x_bf = x.astype(jnp.bfloat16)
    if (Mp, Kp) == (B, In):
        x_p = x_bf                                             # no copy needed
    else:
        x_p = jnp.zeros((Mp, Kp), jnp.bfloat16).at[:B, :In].set(x_bf)

    # GEMV-like regime (single M tile, many weight tiles): deepen the weight
    # pipeline so the streamed-weight DMA stays ahead of the MXU.
    w_buffers = 3 if (gm == 1 and gn * gk >= 3) else 2
    if w_buffers == 3:
        w_spec = pl.BlockSpec((tk, tn), lambda i, j, k: (k, j),
                              pipeline_mode=pl.Buffered(3))
    else:
        w_spec = pl.BlockSpec((tk, tn), lambda i, j, k: (k, j))

    vmem_need = (2 * tm * tk * 2            # x double buffer (bf16)
                 + w_buffers * tk * tn * 2  # weight buffers (bf16)
                 + 2 * 1 * tn * 4           # bias (f32)
                 + 2 * tm * tn * 4)         # resident f32 output tile
    vmem_limit = min(48 * 1024 * 1024, max(32 * 1024 * 1024, 2 * vmem_need))

    out_padded = pl.pallas_call(
        _linear_kernel,
        out_shape=jax.ShapeDtypeStruct((Mp, Np), jnp.float32),
        grid_spec=pltpu.PrefetchScalarGridSpec(
            num_scalar_prefetch=0,
            grid=(gm, gn, gk),
            in_specs=[
                pl.BlockSpec((tm, tk), lambda i, j, k: (i, k)),   # x
                w_spec,                                           # W as (K, N)
                pl.BlockSpec((1, tn), lambda i, j, k: (0, j)),    # bias
            ],
            out_specs=pl.BlockSpec((tm, tn), lambda i, j, k: (i, j)),
        ),
        compiler_params=pltpu.CompilerParams(
            dimension_semantics=("parallel", "parallel", "arbitrary"),
            vmem_limit_bytes=vmem_limit,
        ),
    )(x_p, w_p, b_p)

    return out_padded[:B, :out_features]


class LinearModel:
    """JAX/Pallas equivalent of the PyTorch LinearModel (single nn.Linear)."""

    def __init__(self, weight, bias, *, tm_cap=256, tn_cap=512, tk_cap=2048):
        self.out_features, self.in_features = weight.shape
        self.tm_cap = tm_cap
        self.tn = _pick_tile(self.out_features, 128, tn_cap)
        self.tk = _pick_tile(self.in_features, 128, tk_cap)

        # Keep gn >= 2 when Out is big enough so both v7x TensorCores get work
        # on the 'parallel' j axis in the GEMV regime.
        Np = _round_up(self.out_features, self.tn)
        if Np // self.tn == 1 and Np >= 256 and (Np // 2) % 128 == 0:
            self.tn = Np // 2

        # Pad / cast / transpose the parameters exactly once.
        self.w_p, self.b_p = prepare_linear_params(weight, bias,
                                                   tn=self.tn, tk=self.tk)

    def __call__(self, x):
        tm = _pick_tile(x.shape[0], 8, self.tm_cap)
        return linear_forward_prepared(x, self.w_p, self.b_p, self.out_features,
                                       tm=tm, tn=self.tn, tk=self.tk)


if __name__ == "__main__":
    key = jax.random.PRNGKey(0)
    kx, kw, kb = jax.random.split(key, 3)

    batch, input_size, output_size = 8, 32, 16

    x = jax.random.normal(kx, (batch, input_size), dtype=jnp.float32)
    # Deterministic init mirroring torch.nn.Linear's uniform(-1/sqrt(in), 1/sqrt(in)).
    bound = 1.0 / (input_size ** 0.5)
    weight = jax.random.uniform(kw, (output_size, input_size),
                                minval=-bound, maxval=bound, dtype=jnp.float32)
    bias = jax.random.uniform(kb, (output_size,),
                              minval=-bound, maxval=bound, dtype=jnp.float32)

    model = LinearModel(weight, bias)     # one-time param prep (pad/cast/T)
    y = model(x)
    jax.block_until_ready(y)
    assert y.shape == (batch, output_size)

    # Reference 1: same bf16-in / f32-accumulate math as the kernel (tight tol).
    y_ref_bf16 = jnp.dot(x.astype(jnp.bfloat16),
                         weight.astype(jnp.bfloat16).T,
                         preferred_element_type=jnp.float32) + bias
    assert jnp.allclose(y, y_ref_bf16, atol=1e-3, rtol=1e-3)

    # Reference 2: full-precision torch.nn.Linear math (loose tol for bf16 inputs).
    y_ref_f32 = x @ weight.T + bias
    assert jnp.allclose(y, y_ref_f32, atol=3e-2, rtol=3e-2)

    print("KERNEL_OK")
</pallas_src>

<mosaic_0001>
module attributes {stable_mosaic.version = 11 : i64} {
  func.func @_linear_kernel(%arg0: i32, %arg1: i32, %arg2: i32, %arg3: memref<8x128xbf16, #tpu.memory_space<vmem>>, %arg4: memref<128x128xbf16, #tpu.memory_space<vmem>>, %arg5: memref<1x128xf32, #tpu.memory_space<vmem>>, %arg6: memref<8x128xf32, #tpu.memory_space<vmem>>) attributes {dimension_semantics = [#tpu.dimension_semantics<parallel>, #tpu.dimension_semantics<parallel>, #tpu.dimension_semantics<arbitrary>], iteration_bounds = array<i64: 1, 1, 1>, scalar_prefetch = 0 : i64, scratch_operands = 0 : i64, tpu.core_type = #tpu.core_type<tc>, window_params = [{transform_indices = @transform_0, window_bounds = array<i64: 8, 128>}, {transform_indices = @transform_1, window_bounds = array<i64: 128, 128>}, {transform_indices = @transform_2, window_bounds = array<i64: 1, 128>}, {transform_indices = @transform_3, window_bounds = array<i64: 8, 128>}]} {
    %c0_i32 = arith.constant 0 : i32
    %0 = arith.cmpi eq, %arg2, %c0_i32 : i32
    %1 = arith.extui %0 : i1 to i32
    %c0_i32_0 = arith.constant 0 : i32
    %2 = arith.cmpi ne, %1, %c0_i32_0 : i32
    scf.if %2 {
      %cst_10 = arith.constant 0.000000e+00 : f32
      %12 = vector.broadcast %cst_10 : f32 to vector<8x128xf32>
      %c0_11 = arith.constant 0 : index
      %c0_12 = arith.constant 0 : index
      %13 = vector.load %arg6[%c0_11, %c0_12] : memref<8x128xf32, #tpu.memory_space<vmem>>, vector<8x128xf32>
      tpu.vector_store %arg6[%c0_11, %c0_12], %12 {strides = array<i32>} : memref<8x128xf32, #tpu.memory_space<vmem>>, vector<8x128xf32>,
    } else {
    }
    %c0 = arith.constant 0 : index
    %c0_1 = arith.constant 0 : index
    %3 = vector.load %arg6[%c0, %c0_1] : memref<8x128xf32, #tpu.memory_space<vmem>>, vector<8x128xf32>
    %c0_2 = arith.constant 0 : index
    %c0_3 = arith.constant 0 : index
    %4 = vector.load %arg3[%c0_2, %c0_3] : memref<8x128xbf16, #tpu.memory_space<vmem>>, vector<8x128xbf16>
    %c0_4 = arith.constant 0 : index
    %c0_5 = arith.constant 0 : index
    %5 = vector.load %arg4[%c0_4, %c0_5] : memref<128x128xbf16, #tpu.memory_space<vmem>>, vector<128x128xbf16>
    %cst = arith.constant dense<0.000000e+00> : vector<8x128xf32>
    %6 = tpu.matmul %4, %5, %cst {dimension_numbers = #tpu.dot_dimension_numbers<[1], [0], [0], [1], [0, 0, 1, 1], [], []>} : vector<8x128xbf16>, vector<128x128xbf16>, vector<8x128xf32> -> vector<8x128xf32>
    %7 = arith.addf %3, %6 : vector<8x128xf32>
    %c0_6 = arith.constant 0 : index
    %c0_7 = arith.constant 0 : index
    %8 = vector.load %arg6[%c0_6, %c0_7] : memref<8x128xf32, #tpu.memory_space<vmem>>, vector<8x128xf32>
    tpu.vector_store %arg6[%c0_6, %c0_7], %7 {strides = array<i32>} : memref<8x128xf32, #tpu.memory_space<vmem>>, vector<8x128xf32>,
    %c0_i32_8 = arith.constant 0 : i32
    %9 = arith.cmpi eq, %arg2, %c0_i32_8 : i32
    %10 = arith.extui %9 : i1 to i32
    %c0_i32_9 = arith.constant 0 : i32
    %11 = arith.cmpi ne, %10, %c0_i32_9 : i32
    scf.if %11 {
      %c0_10 = arith.constant 0 : index
      %c0_11 = arith.constant 0 : index
      %12 = vector.load %arg6[%c0_10, %c0_11] : memref<8x128xf32, #tpu.memory_space<vmem>>, vector<8x128xf32>
      %c0_12 = arith.constant 0 : index
      %c0_13 = arith.constant 0 : index
      %13 = vector.load %arg5[%c0_12, %c0_13] : memref<1x128xf32, #tpu.memory_space<vmem>>, vector<1x128xf32>
      %14 = vector.broadcast %13 : vector<1x128xf32> to vector<8x128xf32>
      %15 = arith.addf %12, %14 : vector<8x128xf32>
      %c0_14 = arith.constant 0 : index
      %c0_15 = arith.constant 0 : index
      %16 = vector.load %arg6[%c0_14, %c0_15] : memref<8x128xf32, #tpu.memory_space<vmem>>, vector<8x128xf32>
      tpu.vector_store %arg6[%c0_14, %c0_15], %15 {strides = array<i32>} : memref<8x128xf32, #tpu.memory_space<vmem>>, vector<8x128xf32>,
    } else {
    }
    return
  }
  func.func @transform_0(%arg0: i32, %arg1: i32, %arg2: i32) -> (i32, i32) {
    %c0_i32 = arith.constant 0 : i32
    return %arg0, %arg2 : i32, i32
  }
  func.func @transform_1(%arg0: i32, %arg1: i32, %arg2: i32) -> (i32, i32) {
    %c0_i32 = arith.constant 0 : i32
    return %arg2, %arg1 : i32, i32
  }
  func.func @transform_2(%arg0: i32, %arg1: i32, %arg2: i32) -> (i32, i32) {
    %c0_i32 = arith.constant 0 : i32
    %c0_i32_0 = arith.constant 0 : i32
    return %c0_i32, %arg1 : i32, i32
  }
  func.func @transform_3(%arg0: i32, %arg1: i32, %arg2: i32) -> (i32, i32) {
    %c0_i32 = arith.constant 0 : i32
    return %arg0, %arg1 : i32, i32
  }
}

</mosaic_0001>

<bundles_post_ra>
// kernel: tpu_custom_call.1
= control target key start
LH: loop header
LB: loop body
LE: loop exit
PB: predicated region body
PF: predicated region fallthrough
CT: control target
= control target key end

     0   :  { %8 = vsyncpa [#allocation3], 0  ;;  %s382_s0 = inlined_call_operand.hbm [shape: bf16[8,128], index: 0, kind: input, shape index: {}]   ;;  %s383_s1 = inlined_call_operand.hbm [shape: bf16[128,128], index: 1, kind: input, shape index: {}]   ;;  %s384_s2 = inlined_call_operand.vmem [shape: f32[1,128], index: 2, kind: input, shape index: {}]   ;;  %s385_s3 = inlined_call_operand.hbm [shape: f32[8,128], index: 3, kind: output, shape index: {}]  }
   0x1   :  { %9 = vsyncpa [#allocation6], 0 }
   0x2   :  { %10 = vsyncpa [#allocation4], 0  ;;  %s309_s12 = smov [#allocation2]   ;;  %s310_s14 = smov [#allocation5]  }
   0x3   :  { %s17_s13 = sshll.u32 %s309_s12, 4  ;;  %s26_s15 = sshll.u32 %s310_s14, 4  ;;  %s18_s13 = int_to_ptr.vmem [resolvable:$true] %s17_s13  ;;  %s336_s15 = int_to_ptr.vmem [resolvable:$true] %s26_s15 }
   0x4   :  { %s237_s18 = scalar_lea.hbm %s382_s0, 64 }
   0x5   :  { %p238_p0 = scmp.ne.s32.totalorder %s382_s0, %s237_s18  ;;  %p241_p1 = scmp.lt.u32.totalorder %s237_s18, %s382_s0 }
   0x7   :  { %p243_p2 = pnand %p241_p1, %p238_p0 }
   0x9   :  { %246 = shalt.err (!%p243_p2)
}
   0xa   :  { %s247_s23 = scalar_lea.vmem %s18_s13, 64  ;;  %p252_p4 = scmp.lt.s32.totalorder %s18_s13, %s18_s13 }
   0xb   :  { %p248_p3 = scmp.ne.s32.totalorder %s18_s13, %s247_s23  ;;  %p253_p5 = scmp.lt.s32.totalorder %s247_s23, %s247_s23 }
   0xd   :  { %p254_p6 = por %p253_p5, %p252_p4 }
   0xf   :  { %p255_p7 = pnand %p254_p6, %p248_p3 }
  0x11   :  { %258 = shalt.err (!%p255_p7)
}
  0x12   :  { %20 = dma.hbm_to_vmem [thread:$0]  %s382_s0, 64, %s18_s13, [#allocation3]  }
  0x13   :  { %s259_s28 = scalar_lea.hbm %s383_s1, 1024 }
  0x14   :  { %p260_p8 = scmp.ne.s32.totalorder %s383_s1, %s259_s28  ;;  %p263_p9 = scmp.lt.u32.totalorder %s259_s28, %s383_s1 }
  0x16   :  { %p265_p10 = pnand %p263_p9, %p260_p8 }
  0x18   :  { %268 = shalt.err (!%p265_p10)
}
  0x19   :  { %s269_s6 = scalar_lea.vmem %s336_s15, 1024  ;;  %p274_p12 = scmp.lt.s32.totalorder %s336_s15, %s336_s15 }
  0x1a   :  { %p270_p11 = scmp.ne.s32.totalorder %s336_s15, %s269_s6  ;;  %p275_p13 = scmp.lt.s32.totalorder %s269_s6, %s269_s6 }
  0x1c   :  { %p276_p0 = por %p275_p13, %p274_p12 }
  0x1e   :  { %p277_p1 = pnand %p276_p0, %p270_p11 }
  0x20   :  { %280 = shalt.err (!%p277_p1)
}
  0x21   :  { %s311_s0 = smov 64   ;;  %s312_s7 = smov 4  }
  0x22   :  { %32 = dma.hbm_to_vmem [thread:$0]  %s383_s1, 1024, %s336_s15, [#allocation6], %s311_s0, %s311_s0, %s312_s7  }
  0x23   :  { %303 = dma.done.wait [#allocation3], 64  }
  0x24   :  { %304 = vsyncadd [#allocation3], 4294967232 }
  0x25   :  { %305 = dma.done.wait [#allocation6], 1024  }
  0x26   :  { %306 = vsyncadd [#allocation6], 4294966272  ;;  %v313_v0 = vmov 0.0   ;;  %vm314_vm0 = vmmov 0   ;;  %v229_v1 = vld [vmem:[#allocation5] sm:$0xff]   ;;  %v230_v2 = vld [vmem:[#allocation5 + $0x8] sm:$0xff]  }
  0x27   :  { %202 = vmatprep.subr.bf16.mxu0 %v313_v0  ;;  %218 = vmatprep.mubr.msk.bf16.mxu0 %vm314_vm0, %v313_v0  ;;  %v231_v3 = vld [vmem:[#allocation5 + $0x10] sm:$0xff]   ;;  %v232_v4 = vld [vmem:[#allocation5 + $0x18] sm:$0xff]   ;;  %v233_v5 = vld [vmem:[#allocation5 + $0x20] sm:$0xff]   ;;  %s315_s11 = smov [#allocation7]  }
  0x28   :  { %203 = vmatpush3.bf16.msra.mxu0 %v229_v1  ;;  %v234_v6 = vld [vmem:[#allocation5 + $0x28] sm:$0xff]   ;;  %v235_v7 = vld [vmem:[#allocation5 + $0x30] sm:$0xff]   ;;  %v236_v8 = vld [vmem:[#allocation5 + $0x38] sm:$0xff]   ;;  %s174_s12 = sshll.u32 %s315_s11, 4  ;;  %s175_s12 = int_to_ptr.vmem [resolvable:$true] %s174_s12 }
  0x29   :  { %204 = vmatprep.subr.bf16.mxu0 %v313_v0  ;;  %v48_v9 = vld [vmem:[#allocation2] sm:$0xf]  ;;  %s281_s13 = scalar_lea.vmem %s175_s12, 128  ;;  %p286_p3 = scmp.lt.s32.totalorder %s175_s12, %s175_s12 }
  0x2a   :  { %v192_v11 = vld [vmem:[%s384_s2] ss:$0 sm:$0xff]  ;;  %p282_p2 = scmp.ne.s32.totalorder %s175_s12, %s281_s13  ;;  %p287_p4 = scmp.lt.s32.totalorder %s281_s13, %s281_s13 }
  0x2c   :  { %205 = vmatpush3.bf16.msra.mxu0 %v230_v2  ;;  %p288_p5 = por %p287_p4, %p286_p3 }
  0x2d   :  { %206 = vmatprep.subr.bf16.mxu0 %v313_v0 }
  0x2e   :  { %p289_p6 = pnand %p288_p5, %p282_p2 }
  0x30   :  { %207 = vmatpush3.bf16.msra.mxu0 %v231_v3 }
  0x31   :  { %208 = vmatprep.subr.bf16.mxu0 %v313_v0 }
  0x34   :  { %209 = vmatpush3.bf16.msra.mxu0 %v232_v4 }
  0x35   :  { %210 = vmatprep.subr.bf16.mxu0 %v313_v0 }
  0x38   :  { %211 = vmatpush3.bf16.msra.mxu0 %v233_v5 }
  0x39   :  { %212 = vmatprep.subr.bf16.mxu0 %v313_v0 }
  0x3c   :  { %213 = vmatpush3.bf16.msra.mxu0 %v234_v6 }
  0x3d   :  { %214 = vmatprep.subr.bf16.mxu0 %v313_v0 }
  0x40   :  { %215 = vmatpush3.bf16.msra.mxu0 %v235_v7 }
  0x41   :  { %216 = vmatprep.subr.bf16.mxu0 %v313_v0 }
  0x44   :  { %217 = vmatpush3.bf16.msra.mxu0 %v236_v8 }
  0x47   :  { %219 = vmatmul.mubr.bf16.vlgmr.msra.gmra.mrb[0].mxu0 %v48_v9 }
 0x11a   :  { %v147_v10 = vpop.f32.mrb[0].mxu0 }
 0x11b   :  { %v220_v12 = vpop.f32.mrb[1].mxu0  ;;  %v166_v15 = vadd.f32 %v192_v11, %v147_v10 }
 0x11c   :  { %v150_v13 = vpop.f32.mrb[2].mxu0 }
 0x11d   :  { %v221_v14 = vpop.f32.mrb[3].mxu0  ;;  %167 = vst [vmem:[#allocation7] sm:$0xff] %v166_v15 }
 0x11e   :  { %292 = shalt.err (!%p289_p6)
}
 0x11f   :  { %s293_s16 = scalar_lea.hbm %s385_s3, 128 }
 0x120   :  { %p294_p7 = scmp.ne.s32.totalorder %s385_s3, %s293_s16  ;;  %p297_p8 = scmp.lt.u32.totalorder %s293_s16, %s385_s3 }
 0x122   :  { %p299_p9 = pnand %p297_p8, %p294_p7 }
 0x124   :  { %302 = shalt.err (!%p299_p9)
}
 0x125   :  { %177 = dma.vmem_to_hbm [thread:$0]  %s175_s12, 128, %s385_s3, [#allocation4]  }
 0x126   :  { %307 = dma.done.wait [#allocation4], 128  }
 0x127   :  { %308 = vsyncadd [#allocation4], 4294967168 }
 0x128   :  { %181 = vsyncpa [#allocation3], 1 }
 0x129   :  { %182 = vsyncpa [#allocation6], 1 }
 0x12a   :  { %183 = vsyncpa [#allocation4], 1 }

</bundles_post_ra>
